<compile_context>
chip_gen: v7x
topology: tpu7x:2x2x1
jax: 0.10.0
libtpu: 0.0.40
codegen_flags: <defaults>
</compile_context>

<pallas_src>
import jax
import jax.numpy as jnp
from jax.experimental import pallas as pl
from jax.experimental.pallas import tpu as pltpu

# ---- MultiBoxLoss config (matches the PyTorch __init__ args) ----
NUM_CLASSES = 8          # num_classes
OVERLAP_THRESH = 0.5     # overlap_thresh
NEG_POS_RATIO = 3        # neg_pos
VARIANCE = (0.1, 0.2)    # cfg['variance']


# ----------------------------------------------------------------------------
# Pallas kernel: per-prior confidence CE and smooth-L1 (lane-dense, tiled).
# ----------------------------------------------------------------------------
def _ssd_perprior_kernel(conf_ref, conf_t_ref, loc_p_ref, loc_t_ref,
                         ce_ref, sl1_ref):
    """One (image, prior-tile) block.

    conf_ref  : (1, C, TP)  class scores; classes on sublanes, priors on lanes
    conf_t_ref: (1, 1, TP)  int32 matched class per prior (0 = background)
    loc_p_ref : (1, 4, TP)  predicted box offsets
    loc_t_ref : (1, 4, TP)  encoded target offsets
    ce_ref    : (1, 1, TP)  out: log_sum_exp(conf) - conf[target]   (per prior)
    sl1_ref   : (1, 1, TP)  out: smooth-L1 summed over the 4 coords (per prior)
    """
    conf = conf_ref[0].astype(jnp.float32)                             # (C, TP)
    tgt = conf_t_ref[0]                                                # (1, TP) i32

    # stable log-sum-exp over the class (sublane) axis
    cmax = jnp.max(conf, axis=0, keepdims=True)                        # (1, TP)
    lse = jnp.log(jnp.sum(jnp.exp(conf - cmax), axis=0, keepdims=True)) + cmax

    # conf[target]: one-hot select over the C sublane rows (no (B,P,C) iota tensor)
    cls = jax.lax.broadcasted_iota(jnp.int32, conf.shape, 0)           # (C, TP)
    gathered = jnp.sum(jnp.where(cls == tgt, conf, 0.0),
                       axis=0, keepdims=True)                          # (1, TP)

    ce_ref[0] = lse - gathered                                         # (1, TP)

    # smooth-L1 over the 4 coords (sublane axis)
    diff = loc_p_ref[0].astype(jnp.float32) - loc_t_ref[0].astype(jnp.float32)
    absd = jnp.abs(diff)
    sl1 = jnp.where(absd < 1.0, 0.5 * diff * diff, absd - 0.5)         # (4, TP)
    sl1_ref[0] = jnp.sum(sl1, axis=0, keepdims=True)                   # (1, TP)


def multibox_loss(loc_data, conf_data, loc_t, conf_t, *,
                  prior_tile=128, conf_dma_dtype=None):
    """SSD MultiBoxLoss forward (everything after match()).

    loc_data (B,P,4) f32, conf_data (B,P,C) f32, loc_t (B,P,4) f32, conf_t (B,P) int.
    Returns (loss_l, loss_c), both divided by N = total matched priors.
    """
    B, P, C = conf_data.shape
    TP = int(prior_tile)
    p_pad = (-P) % TP
    Ppad = P + p_pad

    # lane-dense layouts: priors on the 128-lane axis, classes / coords on sublanes
    conf_cbp = jnp.transpose(conf_data, (0, 2, 1))       # (B, C, P)
    loc_p = jnp.transpose(loc_data, (0, 2, 1))           # (B, 4, P)
    loc_te = jnp.transpose(loc_t, (0, 2, 1))             # (B, 4, P)
    conf_ti = conf_t.astype(jnp.int32)[:, None, :]       # (B, 1, P)

    if p_pad:
        pad3 = ((0, 0), (0, 0), (0, p_pad))
        conf_cbp = jnp.pad(conf_cbp, pad3)
        loc_p = jnp.pad(loc_p, pad3)
        loc_te = jnp.pad(loc_te, pad3)
        conf_ti = jnp.pad(conf_ti, pad3)

    if conf_dma_dtype is not None:
        # e.g. jnp.bfloat16 on v5e: halves HBM->VMEM DMA bytes for the dominant
        # input; the kernel upcasts to f32 for all arithmetic.
        conf_cbp = conf_cbp.astype(conf_dma_dtype)

    ce_all, sl1 = pl.pallas_call(
        _ssd_perprior_kernel,
        out_shape=(jax.ShapeDtypeStruct((B, 1, Ppad), jnp.float32),
                   jax.ShapeDtypeStruct((B, 1, Ppad), jnp.float32)),
        grid=(B, Ppad // TP),
        in_specs=[
            pl.BlockSpec((1, C, TP), lambda b, p: (b, 0, p)),
            pl.BlockSpec((1, 1, TP), lambda b, p: (b, 0, p)),
            pl.BlockSpec((1, 4, TP), lambda b, p: (b, 0, p)),
            pl.BlockSpec((1, 4, TP), lambda b, p: (b, 0, p)),
        ],
        out_specs=(
            pl.BlockSpec((1, 1, TP), lambda b, p: (b, 0, p)),
            pl.BlockSpec((1, 1, TP), lambda b, p: (b, 0, p)),
        ),
        compiler_params=pltpu.CompilerParams(
            dimension_semantics=("parallel", "parallel"),
            vmem_limit_bytes=32 * 1024 * 1024),
    )(conf_cbp, conf_ti, loc_p, loc_te)

    ce_all = ce_all[:, 0, :P]                             # (B, P) drop pad priors
    sl1 = sl1[:, 0, :P]                                   # (B, P)

    # ---- reductions + hard-negative mining (O(P log P), plain-JAX glue) ----
    pos = conf_t > 0                                      # (B, P)
    posf = pos.astype(jnp.float32)
    num_pos = jnp.sum(pos.astype(jnp.int32), axis=1)      # (B,)

    loss_l = jnp.sum(sl1 * posf)                          # smooth-L1 over positives
    ce_pos = jnp.sum(ce_all * posf)                       # CE over positives

    # hard negative mining: sum of the num_neg largest background CE values.
    # (Tie-breaking only changes WHICH equal-loss negatives are picked, never the
    #  summed loss, so this matches torch's double-argsort rank exactly.)
    mine = jnp.where(pos, 0.0, ce_all)                    # (B, P)
    num_neg = jnp.minimum(NEG_POS_RATIO * num_pos, P - 1) # (B,)
    topv, _ = jax.lax.top_k(mine, P)                      # descending per image
    csum = jnp.cumsum(topv, axis=1)
    idx = jnp.clip(num_neg - 1, 0, P - 1)[:, None]
    neg_sum = jnp.where(num_neg > 0,
                        jnp.take_along_axis(csum, idx, axis=1)[:, 0], 0.0)
    loss_c = ce_pos + jnp.sum(neg_sum)

    # N = total matched priors; guarded (torch divides blindly -> NaN when N == 0)
    n_total = jnp.maximum(jnp.sum(num_pos).astype(jnp.float32), 1.0)
    return loss_l / n_total, loss_c / n_total


# ----------------------------------------------------------------------------
# Plain-JAX glue: prior/GT matching + encoding (the non-differentiable match()
# step of the PyTorch module; runs per-image on .data in the original).
# ----------------------------------------------------------------------------
def point_form(boxes):
    # center-size (cx,cy,w,h) -> corner (xmin,ymin,xmax,ymax)
    return jnp.concatenate([boxes[:, :2] - boxes[:, 2:] / 2.0,
                            boxes[:, :2] + boxes[:, 2:] / 2.0], axis=1)


def jaccard(box_a, box_b):
    # box_a (T,4), box_b (P,4) both corner-form -> IoU (T,P)
    max_xy = jnp.minimum(box_a[:, None, 2:], box_b[None, :, 2:])
    min_xy = jnp.maximum(box_a[:, None, :2], box_b[None, :, :2])
    inter_wh = jnp.clip(max_xy - min_xy, 0.0, None)
    inter = inter_wh[..., 0] * inter_wh[..., 1]
    area_a = ((box_a[:, 2] - box_a[:, 0]) * (box_a[:, 3] - box_a[:, 1]))[:, None]
    area_b = ((box_b[:, 2] - box_b[:, 0]) * (box_b[:, 3] - box_b[:, 1]))[None, :]
    return inter / (area_a + area_b - inter)


def encode(matched, priors, variances):
    # matched (P,4) corner-form, priors (P,4) center-size
    g_cxcy = (matched[:, :2] + matched[:, 2:]) / 2.0 - priors[:, :2]
    g_cxcy = g_cxcy / (variances[0] * priors[:, 2:])
    g_wh = (matched[:, 2:] - matched[:, :2]) / priors[:, 2:]
    g_wh = jnp.log(jnp.maximum(g_wh, 1e-10)) / variances[1]   # clamp: no -inf targets
    return jnp.concatenate([g_cxcy, g_wh], axis=1)


def match_single(truths, labels, priors, threshold, variances):
    # truths (T,4) corner-form, labels (T,) int, priors (P,4) center-size
    overlaps = jaccard(truths, point_form(priors))          # (T, P)
    best_prior_idx = jnp.argmax(overlaps, axis=1)           # (T,)
    best_truth_overlap = jnp.max(overlaps, axis=0)          # (P,)
    best_truth_idx = jnp.argmax(overlaps, axis=0)           # (P,)
    # ensure each ground-truth gets its best prior
    best_truth_overlap = best_truth_overlap.at[best_prior_idx].set(2.0)
    best_truth_idx = best_truth_idx.at[best_prior_idx].set(
        jnp.arange(truths.shape[0], dtype=best_truth_idx.dtype))
    matches = truths[best_truth_idx]                        # (P, 4)
    conf = labels[best_truth_idx] + 1                       # (P,)
    conf = jnp.where(best_truth_overlap < threshold, 0, conf)
    loc = encode(matches, priors, variances)
    return loc.astype(jnp.float32), conf.astype(jnp.int32)


# ----------------------------------------------------------------------------
if __name__ == "__main__":
    B, P, C, T = 2, 128, NUM_CLASSES, 3   # batch, num_priors, num_classes, objects/img

    # Deterministic priors: 16x8 grid of centers, fixed 0.25 x 0.25 boxes (center-size).
    xs = (jnp.arange(16, dtype=jnp.float32) + 0.5) / 16.0
    ys = (jnp.arange(8, dtype=jnp.float32) + 0.5) / 8.0
    cx, cy = jnp.meshgrid(xs, ys)
    priors = jnp.stack([cx.ravel(), cy.ravel(),
                        jnp.full((P,), 0.25, jnp.float32),
                        jnp.full((P,), 0.25, jnp.float32)], axis=1)   # (P, 4)

    key = jax.random.PRNGKey(0)
    k1, k2, k3, k4, k5 = jax.random.split(key, 5)

    # predictions
    loc_data = 0.1 * jax.random.normal(k1, (B, P, 4), jnp.float32)
    conf_data = jax.random.normal(k2, (B, P, C), jnp.float32)

    # synthetic ground-truth targets: valid corner-form boxes + class labels
    centers = jax.random.uniform(k3, (B, T, 2), minval=0.2, maxval=0.8)
    sizes = jax.random.uniform(k4, (B, T, 2), minval=0.1, maxval=0.3)
    truths = jnp.concatenate([centers - sizes / 2.0, centers + sizes / 2.0], axis=-1)
    labels = jax.random.randint(k5, (B, T), 0, C - 1)

    # match() per image (target construction, done in plain JAX)
    loc_t, conf_t = jax.vmap(
        lambda t, l: match_single(t, l, priors, OVERLAP_THRESH, VARIANCE)
    )(truths, labels)

    loss_l, loss_c = jax.jit(multibox_loss)(loc_data, conf_data, loc_t, conf_t)
    (loss_l, loss_c) = jax.block_until_ready((loss_l, loss_c))

    assert bool(jnp.isfinite(loss_l)) and bool(jnp.isfinite(loss_c))
    print("KERNEL_OK")
</pallas_src>

<mosaic_0001>
module attributes {stable_mosaic.version = 11 : i64} {
  func.func @_ssd_perprior_kernel(%arg0: i32, %arg1: i32, %arg2: memref<1x8x128xf32, #tpu.memory_space<vmem>>, %arg3: memref<1x1x128xi32, #tpu.memory_space<vmem>>, %arg4: memref<1x4x128xf32, #tpu.memory_space<vmem>>, %arg5: memref<1x4x128xf32, #tpu.memory_space<vmem>>, %arg6: memref<1x1x128xf32, #tpu.memory_space<vmem>>, %arg7: memref<1x1x128xf32, #tpu.memory_space<vmem>>) attributes {dimension_semantics = [#tpu.dimension_semantics<parallel>, #tpu.dimension_semantics<parallel>], iteration_bounds = array<i64: 2, 1>, scalar_prefetch = 0 : i64, scratch_operands = 0 : i64, tpu.core_type = #tpu.core_type<tc>, window_params = [{transform_indices = @transform_0, window_bounds = array<i64: 1, 8, 128>}, {transform_indices = @transform_1, window_bounds = array<i64: 1, 1, 128>}, {transform_indices = @transform_2, window_bounds = array<i64: 1, 4, 128>}, {transform_indices = @transform_3, window_bounds = array<i64: 1, 4, 128>}, {transform_indices = @transform_4, window_bounds = array<i64: 1, 1, 128>}, {transform_indices = @transform_5, window_bounds = array<i64: 1, 1, 128>}]} {
    %c0 = arith.constant 0 : index
    %c0_0 = arith.constant 0 : index
    %c0_1 = arith.constant 0 : index
    %0 = vector.load %arg2[%c0, %c0_0, %c0_1] : memref<1x8x128xf32, #tpu.memory_space<vmem>>, vector<1x8x128xf32>
    %1 = vector.shape_cast %0 : vector<1x8x128xf32> to vector<8x128xf32>
    %c0_2 = arith.constant 0 : index
    %c0_3 = arith.constant 0 : index
    %c0_4 = arith.constant 0 : index
    %2 = vector.load %arg3[%c0_2, %c0_3, %c0_4] : memref<1x1x128xi32, #tpu.memory_space<vmem>>, vector<1x1x128xi32>
    %3 = vector.shape_cast %2 : vector<1x1x128xi32> to vector<1x128xi32>
    %cst = arith.constant dense<0xFF800000> : vector<128xf32>
    %4 = vector.multi_reduction <maximumf>, %1, %cst [0] : vector<8x128xf32> to vector<128xf32>
    %5 = vector.shape_cast %4 : vector<128xf32> to vector<1x128xf32>
    %6 = vector.broadcast %5 : vector<1x128xf32> to vector<8x128xf32>
    %7 = arith.subf %1, %6 : vector<8x128xf32>
    %8 = math.exp %7 : vector<8x128xf32>
    %cst_5 = arith.constant dense<0.000000e+00> : vector<128xf32>
    %9 = vector.multi_reduction <add>, %8, %cst_5 [0] : vector<8x128xf32> to vector<128xf32>
    %10 = vector.shape_cast %9 : vector<128xf32> to vector<1x128xf32>
    %11 = math.log %10 : vector<1x128xf32>
    %12 = arith.addf %11, %5 : vector<1x128xf32>
    %13 = tpu.iota {dimensions = array<i32: 0>} : vector<8x128xi32>
    %14 = vector.broadcast %3 : vector<1x128xi32> to vector<8x128xi32>
    %15 = arith.cmpi eq, %13, %14 : vector<8x128xi32>
    %cst_6 = arith.constant 0.000000e+00 : f32
    %16 = vector.broadcast %cst_6 : f32 to vector<8x128xf32>
    %17 = arith.select %15, %1, %16 : vector<8x128xi1>, vector<8x128xf32>
    %cst_7 = arith.constant dense<0.000000e+00> : vector<128xf32>
    %18 = vector.multi_reduction <add>, %17, %cst_7 [0] : vector<8x128xf32> to vector<128xf32>
    %19 = vector.shape_cast %18 : vector<128xf32> to vector<1x128xf32>
    %20 = arith.subf %12, %19 : vector<1x128xf32>
    %c0_8 = arith.constant 0 : index
    %c0_9 = arith.constant 0 : index
    %c0_10 = arith.constant 0 : index
    %21 = vector.load %arg6[%c0_8, %c0_9, %c0_10] : memref<1x1x128xf32, #tpu.memory_space<vmem>>, vector<1x1x128xf32>
    %22 = vector.shape_cast %21 : vector<1x1x128xf32> to vector<1x128xf32>
    %23 = vector.shape_cast %20 : vector<1x128xf32> to vector<1x1x128xf32>
    tpu.vector_store %arg6[%c0_8, %c0_9, %c0_10], %23 {strides = array<i32>} : memref<1x1x128xf32, #tpu.memory_space<vmem>>, vector<1x1x128xf32>,
    %c0_11 = arith.constant 0 : index
    %c0_12 = arith.constant 0 : index
    %c0_13 = arith.constant 0 : index
    %24 = vector.load %arg4[%c0_11, %c0_12, %c0_13] : memref<1x4x128xf32, #tpu.memory_space<vmem>>, vector<1x4x128xf32>
    %25 = vector.shape_cast %24 : vector<1x4x128xf32> to vector<4x128xf32>
    %c0_14 = arith.constant 0 : index
    %c0_15 = arith.constant 0 : index
    %c0_16 = arith.constant 0 : index
    %26 = vector.load %arg5[%c0_14, %c0_15, %c0_16] : memref<1x4x128xf32, #tpu.memory_space<vmem>>, vector<1x4x128xf32>
    %27 = vector.shape_cast %26 : vector<1x4x128xf32> to vector<4x128xf32>
    %28 = arith.subf %25, %27 : vector<4x128xf32>
    %29 = math.absf %28 : vector<4x128xf32>
    %cst_17 = arith.constant 1.000000e+00 : f32
    %30 = vector.broadcast %cst_17 : f32 to vector<4x128xf32>
    %31 = arith.cmpf olt, %29, %30 : vector<4x128xf32>
    %cst_18 = arith.constant 5.000000e-01 : f32
    %32 = vector.broadcast %cst_18 : f32 to vector<4x128xf32>
    %33 = arith.mulf %32, %28 : vector<4x128xf32>
    %34 = arith.mulf %33, %28 : vector<4x128xf32>
    %cst_19 = arith.constant 5.000000e-01 : f32
    %35 = vector.broadcast %cst_19 : f32 to vector<4x128xf32>
    %36 = arith.subf %29, %35 : vector<4x128xf32>
    %37 = arith.select %31, %34, %36 : vector<4x128xi1>, vector<4x128xf32>
    %cst_20 = arith.constant dense<0.000000e+00> : vector<128xf32>
    %38 = vector.multi_reduction <add>, %37, %cst_20 [0] : vector<4x128xf32> to vector<128xf32>
    %39 = vector.shape_cast %38 : vector<128xf32> to vector<1x128xf32>
    %c0_21 = arith.constant 0 : index
    %c0_22 = arith.constant 0 : index
    %c0_23 = arith.constant 0 : index
    %40 = vector.load %arg7[%c0_21, %c0_22, %c0_23] : memref<1x1x128xf32, #tpu.memory_space<vmem>>, vector<1x1x128xf32>
    %41 = vector.shape_cast %40 : vector<1x1x128xf32> to vector<1x128xf32>
    %42 = vector.shape_cast %39 : vector<1x128xf32> to vector<1x1x128xf32>
    tpu.vector_store %arg7[%c0_21, %c0_22, %c0_23], %42 {strides = array<i32>} : memref<1x1x128xf32, #tpu.memory_space<vmem>>, vector<1x1x128xf32>,
    return
  }
  func.func @transform_0(%arg0: i32, %arg1: i32) -> (i32, i32, i32) {
    %c0_i32 = arith.constant 0 : i32
    %c0_i32_0 = arith.constant 0 : i32
    return %arg0, %c0_i32, %arg1 : i32, i32, i32
  }
  func.func @transform_1(%arg0: i32, %arg1: i32) -> (i32, i32, i32) {
    %c0_i32 = arith.constant 0 : i32
    %c0_i32_0 = arith.constant 0 : i32
    return %arg0, %c0_i32, %arg1 : i32, i32, i32
  }
  func.func @transform_2(%arg0: i32, %arg1: i32) -> (i32, i32, i32) {
    %c0_i32 = arith.constant 0 : i32
    %c0_i32_0 = arith.constant 0 : i32
    return %arg0, %c0_i32, %arg1 : i32, i32, i32
  }
  func.func @transform_3(%arg0: i32, %arg1: i32) -> (i32, i32, i32) {
    %c0_i32 = arith.constant 0 : i32
    %c0_i32_0 = arith.constant 0 : i32
    return %arg0, %c0_i32, %arg1 : i32, i32, i32
  }
  func.func @transform_4(%arg0: i32, %arg1: i32) -> (i32, i32, i32) {
    %c0_i32 = arith.constant 0 : i32
    %c0_i32_0 = arith.constant 0 : i32
    return %arg0, %c0_i32, %arg1 : i32, i32, i32
  }
  func.func @transform_5(%arg0: i32, %arg1: i32) -> (i32, i32, i32) {
    %c0_i32 = arith.constant 0 : i32
    %c0_i32_0 = arith.constant 0 : i32
    return %arg0, %c0_i32, %arg1 : i32, i32, i32
  }
}

</mosaic_0001>

<bundles_post_ra>
// kernel: multibox_loss.1
= control target key start
LH: loop header
LB: loop body
LE: loop exit
PB: predicated region body
PF: predicated region fallthrough
CT: control target
= control target key end

     0   :  { %11 = vsyncpa [#allocation3], 0  ;;  %s898_s0 = inlined_call_operand.vmem [shape: f32[2,8,128], index: 0, kind: input, shape index: {}]   ;;  %s899_s1 = inlined_call_operand.vmem [shape: s32[2,1,128], index: 1, kind: input, shape index: {}]   ;;  %s900_s2 = inlined_call_operand.vmem [shape: f32[2,4,128], index: 2, kind: input, shape index: {}]   ;;  %s901_s3 = inlined_call_operand.hbm [shape: f32[2,4,128], index: 3, kind: input, shape index: {}]   ;;  %s902_s4 = inlined_call_operand.vmem [shape: f32[2,1,128], index: 4, kind: output, shape index: {0}]   ;;  %s903_s5 = inlined_call_operand.vmem [shape: f32[2,1,128], index: 5, kind: output, shape index: {1}]  }
   0x1   :  { %13 = vsyncpa [#allocation3 + $0x1], 0  ;;  %s754_s18 = smov 0   ;;  %s756_s19 = smov 0  }
   0x2   :  { %s758_s20 = smov 0   ;;  %s760_s21 = smov 0  }
   0x3   :  { %s762_s22 = smov 0   ;;  %s764_s23 = smov 0  }
   0x4 LB: > { %s568_s24 = sadd.s32 4294967295, %s721_s23   ;;  %s31_s25 = sadd.s32 1, %s717_s22  ;;  %s721_s23 = sphi %s764_s23, %s19_s23   ;;  %s717_s22 = sphi %s762_s22, %s913_s22   ;;  %s713_s21 = sphi %s760_s21, %s912_s21   ;;  %s709_s20 = sphi %s758_s20, %s911_s20   ;;  %s705_s19 = sphi %s756_s19, %s910_s19   ;;  %s701_s18 = sphi %s754_s18, %s909_s18  }
   0x5   : > { %p33_p0 = scmp.ge.s32.totalorder %s31_s25, 2  ;;  %s124_s26 = sadd.s32 1, %s709_s20 }
   0x6   : > { %p131_p1 = scmp.ne.s32.totalorder %s709_s20, %s705_s19  ;;  %p132_p2 = scmp.eq.s32.totalorder %s721_s23, 0 }
   0x7   : > { %s915_s25 = smov (%p33_p0, %s31_s25), 0  ;;  %p137_p4 = scmp.ne.s32.totalorder %s705_s19, %s701_s18 }
   0x8   : > { %p790_p3 = por %p132_p2, %p131_p1  ;;  %s119_s28 = ssub.s32 %s717_s22, %s915_s25 }
   0x9   : > { %p138_p5 = scmp.eq.s32.totalorder %s568_s24, 0  ;;  %p122_p6 = scmp.eq.s32.totalorder %s119_s28, 0 }
   0xa   : > { %p588_p8 = scmp.lt.s32.totalorder %s721_s23, 2  ;;  %s246_s6 = sand.u32 1, %s709_s20  }
   0xb   : > { %p797_p7 = por %p138_p5, %p137_p4  ;;  %s573_s7 = sshll.u32 %s717_s22, 6 }
   0xc   : > { %s803_s30 = scalar_select %p122_p6, %s709_s20, %s124_s26  }
   0xd   : > { %s572_s8 = sshll.u32 %s246_s6, 2  ;;  %s810_s11 = scalar_lea.hbm %s901_s3, %s573_s7 }
   0xe   : > { %s250_s12 = scalar_lea.vmem [#allocation2], %s572_s8  ;;  %p814_p9 = pnand %p588_p8, %p790_p3 }
   0xf   : > { %s258_s13 = sshll.u32 %s250_s12, 4  ;;  %s247_s15 = scalar_lea.sflag [#allocation3], %s246_s6  ;;  %s818_s13 = int_to_ptr.vmem [resolvable:$true] %s258_s13 }
  0x10   : > { %s641_s16 = scalar_lea.hbm %s810_s11, 64  ;;  %p643_p13 = pneg %p814_p9 }
  0x11   : > { %p642_p12 = scmp.ne.s32.totalorder %s810_s11, %s641_s16  ;;  %s646_s24 = scalar_lea.hbm %s901_s3, 128 }
  0x12   : > { %p647_p2 = scmp.lt.u32.totalorder %s810_s11, %s901_s3  ;;  %p648_p3 = scmp.lt.u32.totalorder %s646_s24, %s641_s16 }
  0x13   : > { %p644_p0 = pnand %p643_p13, %p642_p12  ;;  %p650_p5 = scmp.lt.u32.totalorder %s641_s16, %s810_s11 }
  0x14   : > { %p649_p4 = por %p648_p3, %p647_p2 }
  0x15   : > { %p645_p1 = pneg %p644_p0 }
  0x16   : > { %p651_p6 = por %p650_p5, %p649_p4 }
  0x18   : > { %p652_p8 = pnand %p651_p6, %p645_p1 }
  0x1a   : > { %655 = shalt.err (!%p652_p8)
}
  0x1b   : > { %s656_s28 = scalar_lea.vmem %s818_s13, 64  ;;  %s723_s6 = smov [#allocation2]  }
  0x1c   : > { %p657_p12 = scmp.ne.s32.totalorder %s818_s13, %s656_s28  ;;  %s661_s7 = sshll.u32 %s723_s6, 4  ;;  %s662_s7 = int_to_ptr.vmem [resolvable:$false] %s661_s7 }
  0x1d   : > { %s663_s8 = scalar_lea.vmem %s662_s7, 128  ;;  %p664_p11 = scmp.lt.s32.totalorder %s818_s13, %s662_s7 }
  0x1e   : > { %p659_p0 = pnand %p657_p12, %p643_p13  ;;  %p665_p2 = scmp.lt.s32.totalorder %s663_s8, %s656_s28 }
  0x20   : > { %p660_p10 = pneg %p659_p0  ;;  %p666_p3 = por %p665_p2, %p664_p11 }
  0x22   : > { %p667_p4 = pnand %p666_p3, %p660_p10 }
  0x24   : > { %670 = shalt.err (!%p667_p4)
}
  0x25   : > { %587 = dma.hbm_to_vmem [thread:$0]  (!%p814_p9), %s810_s11, 64, %s818_s13, %s247_s15  }
  0x26   : > { %p907_p1 = scmp.lt.s32.totalorder %s721_s23, 3  ;;  %p908_p5 = scmp.ge.s32.totalorder %s721_s23, 1 }
  0x28   : > { %p264_p13 = pnand %p908_p5, %p907_p1 }
  0x29   : > { %s269_s9 = sand.u32 (!%p264_p13), 1, %s705_s19  }
  0x2a   : > { %267 = sbr.rel (%p264_p13) target bundleno = 113 (0x71), region = 36  ;;  %s575_s10 = sshll.u32 (!%p264_p13), %s269_s9, 2 }
  0x2b   : > { %s270_s12 = scalar_lea.sflag (!%p264_p13), [#allocation3], %s269_s9  ;;  %s273_s16 = scalar_lea.vmem (!%p264_p13), [#allocation2], %s575_s10 }
  0x31   : > { %696 = dma.done.wait (%p797_p7), %s270_s12, 64  }
  0x32   : > { %698 = vsyncadd (%p797_p7), %s270_s12, 4294967232  ;;  %p327_p10 = scmp.lt.s32.totalorder %s713_s21, 1  ;;  %v396_v1 = vld [vmem:[%s273_s16] sm:$0xf]  ;;  %vm404_vm1 = vcmask 1043456   ;;  %v379_v22 = vlaneseq }
  0x34   : > { %s917_s21 = smov (!%p327_p10, %s713_s21), 1  ;;  %v380_v25 = vshrl.u32 %v379_v22, 7 }
  0x35   : > { %s576_s11 = sshll.u32 %s917_s21, 3  ;;  %s577_s17 = sshll.u32 %s917_s21, 2 }
  0x36   : > { %s333_s15 = scalar_lea.vmem %s898_s0, %s576_s11  ;;  %s346_s26 = scalar_lea.vmem %s900_s2, %s577_s17 }
  0x37   : > { %v359_v0 = vld [vmem:[%s333_s15] sm:$0xff]  ;;  %s339_s28 = scalar_lea.vmem %s899_s1, %s917_s21  ;;  %s358_s8 = scalar_lea.vmem %s903_s5, %s917_s21 }
  0x38   : > { %v361_v2 = vrot.slane %v359_v0, 4  ;;  %v395_v3 = vld [vmem:[%s346_s26] sm:$0xf]  ;;  %s352_s12 = scalar_lea.vmem %s902_s4, %s917_s21 }
  0x39   : > { %v397_v4 = vsub.f32 %v395_v3, %v396_v1  ;;  %v578_v26 = vld [vmem:[%s339_s28] ss:$0 sm:$0xff] }
  0x3a   : > { %v362_v5 = vmax.f32 %v359_v0, %v361_v2  ;;  %vm385_vm2 = vcmp.eq.s32.totalorder %v380_v25, %v578_v26 }
  0x3b   : > { %v398_v6 = vand.u32 2147483647, %v397_v4  ;;  %v400_v7 = vmul.f32 0.5, %v397_v4  ;;  %v386_v29 = vsel %vm385_vm2, %v359_v0, 0.0 }
  0x3c   : > { %v363_v8 = vrot.slane %v362_v5, 2  ;;  %v387_v31 = vrot.slane %v386_v29, 4 }
  0x3d   : > { %vm399_vm0 = vcmp.lt.f32.partialorder %v398_v6, 1.0  ;;  %v401_v9 = vmul.f32 %v400_v7, %v397_v4  ;;  %v579_v10 = vadd.f32 -0.5, %v398_v6 }
  0x3e   : > { %v364_v11 = vmax.f32 %v362_v5, %v363_v8  ;;  %v388_v34 = vadd.f32 %v387_v31, %v386_v29 }
  0x3f   : > { %v403_v12 = vsel %vm399_vm0, %v401_v9, %v579_v10 }
  0x40   : > { %v365_v13 = vrot.slane %v364_v11, 1  ;;  %v405_v14 = vsel %vm404_vm1, %v403_v12, 0.0  ;;  %v389_v37 = vrot.slane %v388_v34, 2 }
  0x41   : > { %v406_v15 = vrot.slane %v405_v14, 4 }
  0x42   : > { %v366_v16 = vmax.f32 %v364_v11, %v365_v13  ;;  %v390_v38 = vadd.f32 %v389_v37, %v388_v34 }
  0x43   : > { %v407_v17 = vadd.f32 %v406_v15, %v405_v14 }
  0x44   : > { %v367_v18 = vsub.f32 %v359_v0, %v366_v16  ;;  %v391_v39 = vrot.slane %v390_v38, 1 }
  0x45   : > { %v408_v19 = vrot.slane %v407_v17, 2 }
  0x46   : > { %v368_v20 = vmul.f32 1.442695, %v367_v18  ;;  %v392_v42 = vadd.f32 %v391_v39, %v390_v38 }
  0x47   : > { %v409_v21 = vadd.f32 %v408_v19, %v407_v17 }
  0x48   : > { %637 = vpow2.f32 %v368_v20 }
  0x49   : > { %v410_v23 = vrot.slane %v409_v21, 1 }
  0x4b   : > { %v411_v24 = vadd.f32 %v410_v23, %v409_v21 }
  0x4d   : > { %412 = vst [vmem:[%s358_s8] sm:$0x1] %v411_v24 }
  0x52   : > { %v638_v27 = vpop.eup %637 }
  0x53   : > { %v370_v28 = vrot.slane %v638_v27, 4 }
  0x55   : > { %v371_v30 = vadd.f32 %v638_v27, %v370_v28 }
  0x57   : > { %v372_v32 = vrot.slane %v371_v30, 2 }
  0x59   : > { %v373_v33 = vadd.f32 %v372_v32, %v371_v30 }
  0x5b   : > { %v374_v35 = vrot.slane %v373_v33, 1 }
  0x5d   : > { %v375_v36 = vadd.f32 %v374_v35, %v373_v33 }
  0x5f   : > { %639 = vlog2.f32 %v375_v36 }
  0x69   : > { %v640_v40 = vpop.eup %639 }
  0x6a   : > { %v377_v41 = vmul.f32 0.6931472, %v640_v40 }
  0x6c   : > { %v378_v43 = vadd.f32 %v377_v41, %v366_v16 }
  0x6e   : > { %v393_v44 = vsub.f32 %v378_v43, %v392_v42 }
  0x70   : > { %394 = vst [vmem:[%s352_s12] sm:$0x1] %v393_v44 }
  0x71 PF: > { %s19_s23 = sadd.s32 1, %s721_s23   ;;  %s909_s18 = smov %s705_s19 }
  0x72   : > { %p16_p7 = scmp.ge.s32.totalorder %s19_s23, 4   ;;  %s910_s19 = smov %s709_s20 }
  0x73   : > { %s911_s20 = smov %s803_s30  ;;  %s912_s21 = smov %s717_s22 }
  0x74   : > { %s913_s22 = smov %s915_s25  ;;  %18 = sbr.rel (!%p16_p7) target bundleno = 4 (0x4), region = 97 }
  0x7b   :  { %454 = vsyncpa [#allocation3], 1 }
  0x7c   :  { %456 = vsyncpa [#allocation3 + $0x1], 1 }

</bundles_post_ra>
